<compile_context>
chip_gen: v5e
topology: v5e:2x2
jax: 0.10.0
libtpu: 0.0.40
codegen_flags: <defaults>
</compile_context>

<pallas_src>
import jax
import jax.numpy as jnp
from jax.experimental import pallas as pl
from jax.experimental.pallas import tpu as pltpu

# ----------------------------- model dims (small) ------------------------------
BATCH = 2
SEQ = 8
HIDDEN = 32          # stand-in for bert.config.hidden_size (1024 in bert-large)
NUMERIC = 1          # numeric_input_size
MLP_HIDDEN = 256
VOCAB = 100

TILE_B = 8           # f32 sublane count; raise to 128-256 for real batch sizes
OUT_LANES = 128      # lane-dense output width

# rows of the packed small-parameter tile
_ROW_BPOOL = 0       # pooler bias, first HIDDEN lanes valid
_ROW_W1B = 1         # W1 row multiplying the numeric feature
_ROW_B1 = 2          # first MLP bias
_ROW_W2T = 3         # second MLP weight, transposed to (256,)
_ROW_B2 = 4          # final bias scalar at lane 0
N_AUX_ROWS = 5


# --------------------------------- kernel --------------------------------------
def bert_mlp_kernel(ids_ref, emb_ref, num_ref, wp_ref, w1a_ref, aux_ref,
                    out_ref, cls_scratch):
    """Fused [CLS]-gather + BERT pooler + MLP head.

    grid = (batch_tiles, TILE_B); axis 1 gathers one CLS row per step.

    ids_ref : (B_pad,)   SMEM  scalar-prefetch CLS ids (consumed by index_maps)
    emb_ref : (1,1,H)    VMEM  gathered embedding row for this (tile, row)
    num_ref : (TILE_B,1) VMEM  numeric feature column for this tile
    wp_ref  : (H,H)      VMEM  bf16 pooler dense weight            (resident)
    w1a_ref : (H,256)    VMEM  bf16 W1 rows multiplying pooled_out (resident)
    aux_ref : (5,256)    VMEM  f32 packed small params             (resident)
    out_ref : (TILE_B,128) VMEM lane-broadcast per-row results
    cls_scratch : (TILE_B,H) VMEM gathered CLS rows for this tile
    """
    del ids_ref  # only used by the BlockSpec index_maps (DMA-time gather)
    r = pl.program_id(1)

    # Phase 1: stash this row's [CLS] hidden vector (already DMA-gathered).
    cls_scratch[pl.ds(r, 1), :] = emb_ref[0]

    # Phase 2: once the tile is full, run the fused pooler + MLP head.
    @pl.when(r == pl.num_programs(1) - 1)
    def _():
        cls_h = cls_scratch[...]                               # (TILE_B, H) f32
        num = num_ref[...]                                     # (TILE_B, 1) f32

        bp = aux_ref[_ROW_BPOOL:_ROW_BPOOL + 1, :HIDDEN]       # (1, H)
        w1b = aux_ref[_ROW_W1B:_ROW_W1B + 1, :]                # (1, 256)
        b1 = aux_ref[_ROW_B1:_ROW_B1 + 1, :]                   # (1, 256)
        w2t = aux_ref[_ROW_W2T:_ROW_W2T + 1, :]                # (1, 256)
        b2 = aux_ref[_ROW_B2:_ROW_B2 + 1, 0:1]                 # (1, 1)

        # BERT pooler: tanh(dense(cls)) — bf16 MXU operands, f32 accumulation.
        pooled = jnp.tanh(
            jnp.dot(cls_h.astype(jnp.bfloat16), wp_ref[...],
                    preferred_element_type=jnp.float32) + bp)

        # cat([pooled, numeric], 1) @ W1 == pooled @ W1[:H] + numeric * W1[H]
        # (the K=1 term is a VPU broadcast FMA, not an MXU matmul)
        h = (jnp.dot(pooled.astype(jnp.bfloat16), w1a_ref[...],
                     preferred_element_type=jnp.float32)
             + num * w1b + b1)
        h = jnp.maximum(h, 0.0)  # ReLU
        # TODO(synk): Dropout(0.3) is identity in eval/inference; training-mode
        # stochastic masking (pltpu.prng_seed + prng_random_bits) not reproduced.

        # Final Linear(256, 1) as VPU multiply + XLU lane reduction (no N=1 MXU).
        res = jnp.sum(h * w2t, axis=-1, keepdims=True) + b2    # (TILE_B, 1)

        # Lane-dense store (unmasked vst); wrapper slices lane 0.
        out_ref[...] = jnp.broadcast_to(res, (TILE_B, OUT_LANES))


# ------------------------------ params / packing --------------------------------
def make_params(key):
    """Raw parameters mirroring the PyTorch module layout."""
    ks = jax.random.split(key, 7)
    scale = 0.02
    return {
        # TODO(synk): stand-in embedding table; the frozen pretrained BERT
        # encoder (which consumes attention_mask) cannot be loaded in-script.
        "embedding": scale * jax.random.normal(ks[0], (VOCAB, HIDDEN), jnp.float32),
        "w_pool": scale * jax.random.normal(ks[1], (HIDDEN, HIDDEN), jnp.float32),
        "b_pool": scale * jax.random.normal(ks[2], (1, HIDDEN), jnp.float32),
        "w1": scale * jax.random.normal(ks[3], (HIDDEN + NUMERIC, MLP_HIDDEN), jnp.float32),
        "b1": scale * jax.random.normal(ks[4], (1, MLP_HIDDEN), jnp.float32),
        "w2": scale * jax.random.normal(ks[5], (MLP_HIDDEN, 1), jnp.float32),
        "b2": scale * jax.random.normal(ks[6], (1, 1), jnp.float32),
    }


def pack_params(p):
    """One-time repacking into kernel-friendly operands (done outside forward)."""
    aux = jnp.zeros((N_AUX_ROWS, MLP_HIDDEN), jnp.float32)
    aux = aux.at[_ROW_BPOOL, :HIDDEN].set(p["b_pool"].reshape(-1))
    aux = aux.at[_ROW_W1B, :].set(p["w1"][HIDDEN, :])
    aux = aux.at[_ROW_B1, :].set(p["b1"].reshape(-1))
    aux = aux.at[_ROW_W2T, :].set(p["w2"].reshape(-1))
    aux = aux.at[_ROW_B2, 0].set(p["b2"][0, 0])
    return {
        # (VOCAB, 1, H): the gather index rides the leading (untiled) axis so
        # the last two block dims equal the full array dims.
        "emb3d": p["embedding"].reshape(VOCAB, 1, HIDDEN),
        "w_pool_bf16": p["w_pool"].astype(jnp.bfloat16),
        "w1a_bf16": p["w1"][:HIDDEN, :].astype(jnp.bfloat16),
        "aux": aux,
    }


# --------------------------------- wrapper ---------------------------------------
def bert_mlp_forward(packed, input_ids, attention_mask, numeric_feature):
    # TODO(synk): attention_mask is consumed only by the frozen (un-reproducible)
    # BERT encoder; with the embedding stand-in it is unused.
    del attention_mask

    batch = input_ids.shape[0]
    b_pad = ((batch + TILE_B - 1) // TILE_B) * TILE_B
    num_tiles = b_pad // TILE_B

    # Pad the batch to a full sublane multiple (index 0 is a valid gather row).
    cls_ids = jnp.pad(input_ids[:, 0].astype(jnp.int32), (0, b_pad - batch))
    numeric = jnp.pad(numeric_feature.astype(jnp.float32),
                      (0, b_pad - batch)).reshape(b_pad, 1)

    grid_spec = pltpu.PrefetchScalarGridSpec(
        num_scalar_prefetch=1,
        grid=(num_tiles, TILE_B),
        in_specs=[
            # [CLS] rows gathered during the input DMA from the prefetched ids.
            pl.BlockSpec((1, 1, HIDDEN),
                         lambda t, r, ids: (ids[t * TILE_B + r], 0, 0)),
            pl.BlockSpec((TILE_B, 1), lambda t, r, ids: (t, 0)),
            # Weight/aux index_maps are batch-independent -> fetched once, resident.
            pl.BlockSpec((HIDDEN, HIDDEN), lambda t, r, ids: (0, 0)),
            pl.BlockSpec((HIDDEN, MLP_HIDDEN), lambda t, r, ids: (0, 0)),
            pl.BlockSpec((N_AUX_ROWS, MLP_HIDDEN), lambda t, r, ids: (0, 0)),
        ],
        out_specs=pl.BlockSpec((TILE_B, OUT_LANES), lambda t, r, ids: (t, 0)),
        scratch_shapes=[pltpu.VMEM((TILE_B, HIDDEN), jnp.float32)],
    )

    out = pl.pallas_call(
        bert_mlp_kernel,
        grid_spec=grid_spec,
        out_shape=jax.ShapeDtypeStruct((b_pad, OUT_LANES), jnp.float32),
        compiler_params=pltpu.CompilerParams(
            # Batch-tile axis parallel (v7x: splits across both TensorCores);
            # the per-row gather axis shares the tile scratch -> "arbitrary".
            dimension_semantics=("parallel", "arbitrary")),
    )(cls_ids, packed["emb3d"], numeric,
      packed["w_pool_bf16"], packed["w1a_bf16"], packed["aux"])

    return out[:batch, :1]


# ----------------------------- pure-JAX reference --------------------------------
def bert_mlp_reference(p, input_ids, attention_mask, numeric_feature):
    del attention_mask
    cls_hidden = jnp.take(p["embedding"], input_ids[:, 0], axis=0)
    pooled = jnp.tanh(cls_hidden @ p["w_pool"] + p["b_pool"])
    combined = jnp.concatenate(
        [pooled, numeric_feature[:, None].astype(jnp.float32)], axis=1)
    h = jnp.maximum(combined @ p["w1"] + p["b1"], 0.0)
    return h @ p["w2"] + p["b2"]


# ----------------------------------- main -----------------------------------------
if __name__ == "__main__":
    key = jax.random.PRNGKey(0)
    k_param, k_ids, k_num = jax.random.split(key, 3)

    params = make_params(k_param)
    packed = pack_params(params)

    input_ids = jax.random.randint(k_ids, (BATCH, SEQ), 0, VOCAB, dtype=jnp.int32)
    attention_mask = jnp.ones((BATCH, SEQ), dtype=jnp.int32)
    numeric_feature = jax.random.normal(k_num, (BATCH,), jnp.float32)

    out = bert_mlp_forward(packed, input_ids, attention_mask, numeric_feature)
    jax.block_until_ready(out)

    ref = bert_mlp_reference(params, input_ids, attention_mask, numeric_feature)
    assert out.shape == (BATCH, 1) and out.dtype == jnp.float32
    # NOTE: bf16 MXU operands + split K=H+1 contraction change accumulation
    # order / precision vs. the f32 reference; compare with a tolerance.
    assert jnp.allclose(out, ref, atol=2e-3, rtol=5e-2), (out, ref)

    print("KERNEL_OK")
</pallas_src>

<mosaic_0001>
module attributes {stable_mosaic.version = 11 : i64} {
  func.func @bert_mlp_kernel(%arg0: i32, %arg1: i32, %arg2: memref<8xi32, #tpu.memory_space<smem>>, %arg3: memref<1x1x32xf32, #tpu.memory_space<vmem>>, %arg4: memref<8x1xf32, #tpu.memory_space<vmem>>, %arg5: memref<32x32xbf16, #tpu.memory_space<vmem>>, %arg6: memref<32x256xbf16, #tpu.memory_space<vmem>>, %arg7: memref<5x256xf32, #tpu.memory_space<vmem>>, %arg8: memref<8x128xf32, #tpu.memory_space<vmem>>, %arg9: memref<8x32xf32, #tpu.memory_space<vmem>>) attributes {dimension_semantics = [#tpu.dimension_semantics<parallel>, #tpu.dimension_semantics<arbitrary>], iteration_bounds = array<i64: 1, 8>, scalar_prefetch = 1 : i64, scratch_operands = 1 : i64, tpu.core_type = #tpu.core_type<tc>, window_params = [{transform_indices = @transform_0, window_bounds = array<i64: 1, 1, 32>}, {transform_indices = @transform_1, window_bounds = array<i64: 8, 1>}, {pipeline_mode = #tpu.pipeline_mode<synchronous>, transform_indices = @transform_2, window_bounds = array<i64: 32, 32>}, {pipeline_mode = #tpu.pipeline_mode<synchronous>, transform_indices = @transform_3, window_bounds = array<i64: 32, 256>}, {pipeline_mode = #tpu.pipeline_mode<synchronous>, transform_indices = @transform_4, window_bounds = array<i64: 5, 256>}, {transform_indices = @transform_5, window_bounds = array<i64: 8, 128>}]} {
    %c0 = arith.constant 0 : index
    %c0_0 = arith.constant 0 : index
    %c0_1 = arith.constant 0 : index
    %0 = vector.load %arg3[%c0, %c0_0, %c0_1] : memref<1x1x32xf32, #tpu.memory_space<vmem>>, vector<1x1x32xf32>
    %1 = vector.shape_cast %0 : vector<1x1x32xf32> to vector<1x32xf32>
    %2 = arith.index_cast %arg1 : i32 to index
    %c0_2 = arith.constant 0 : index
    %3 = vector.load %arg9[%2, %c0_2] : memref<8x32xf32, #tpu.memory_space<vmem>>, vector<1x32xf32>
    tpu.vector_store %arg9[%2, %c0_2], %1 {strides = array<i32>} : memref<8x32xf32, #tpu.memory_space<vmem>>, vector<1x32xf32>,
    %c7_i32 = arith.constant 7 : i32
    %4 = arith.cmpi eq, %arg1, %c7_i32 : i32
    %5 = arith.extui %4 : i1 to i32
    %c0_i32 = arith.constant 0 : i32
    %6 = arith.cmpi ne, %5, %c0_i32 : i32
    scf.if %6 {
      %c0_3 = arith.constant 0 : index
      %c0_4 = arith.constant 0 : index
      %7 = vector.load %arg9[%c0_3, %c0_4] : memref<8x32xf32, #tpu.memory_space<vmem>>, vector<8x32xf32>
      %c0_5 = arith.constant 0 : index
      %c0_6 = arith.constant 0 : index
      %8 = vector.load %arg4[%c0_5, %c0_6] : memref<8x1xf32, #tpu.memory_space<vmem>>, vector<8x1xf32>
      %c0_7 = arith.constant 0 : index
      %c0_8 = arith.constant 0 : index
      %9 = vector.load %arg7[%c0_7, %c0_8] : memref<5x256xf32, #tpu.memory_space<vmem>>, vector<1x32xf32>
      %c1 = arith.constant 1 : index
      %c0_9 = arith.constant 0 : index
      %10 = vector.load %arg7[%c1, %c0_9] : memref<5x256xf32, #tpu.memory_space<vmem>>, vector<1x256xf32>
      %c2 = arith.constant 2 : index
      %c0_10 = arith.constant 0 : index
      %11 = vector.load %arg7[%c2, %c0_10] : memref<5x256xf32, #tpu.memory_space<vmem>>, vector<1x256xf32>
      %c3 = arith.constant 3 : index
      %c0_11 = arith.constant 0 : index
      %12 = vector.load %arg7[%c3, %c0_11] : memref<5x256xf32, #tpu.memory_space<vmem>>, vector<1x256xf32>
      %c4 = arith.constant 4 : index
      %c0_12 = arith.constant 0 : index
      %13 = vector.load %arg7[%c4, %c0_12] : memref<5x256xf32, #tpu.memory_space<vmem>>, vector<1x1xf32>
      %14 = arith.truncf %7 : vector<8x32xf32> to vector<8x32xbf16>
      %c0_13 = arith.constant 0 : index
      %c0_14 = arith.constant 0 : index
      %15 = vector.load %arg5[%c0_13, %c0_14] : memref<32x32xbf16, #tpu.memory_space<vmem>>, vector<32x32xbf16>
      %cst = arith.constant dense<0.000000e+00> : vector<8x32xf32>
      %16 = tpu.matmul %14, %15, %cst {dimension_numbers = #tpu.dot_dimension_numbers<[1], [0], [0], [1], [0, 0, 1, 1], [], []>} : vector<8x32xbf16>, vector<32x32xbf16>, vector<8x32xf32> -> vector<8x32xf32>
      %17 = vector.broadcast %9 : vector<1x32xf32> to vector<8x32xf32>
      %18 = arith.addf %16, %17 : vector<8x32xf32>
      %19 = math.tanh %18 : vector<8x32xf32>
      %20 = arith.truncf %19 : vector<8x32xf32> to vector<8x32xbf16>
      %c0_15 = arith.constant 0 : index
      %c0_16 = arith.constant 0 : index
      %21 = vector.load %arg6[%c0_15, %c0_16] : memref<32x256xbf16, #tpu.memory_space<vmem>>, vector<32x256xbf16>
      %cst_17 = arith.constant dense<0.000000e+00> : vector<8x256xf32>
      %22 = tpu.matmul %20, %21, %cst_17 {dimension_numbers = #tpu.dot_dimension_numbers<[1], [0], [0], [1], [0, 0, 1, 1], [], []>} : vector<8x32xbf16>, vector<32x256xbf16>, vector<8x256xf32> -> vector<8x256xf32>
      %23 = vector.broadcast %8 : vector<8x1xf32> to vector<8x256xf32>
      %24 = vector.broadcast %10 : vector<1x256xf32> to vector<8x256xf32>
      %25 = arith.mulf %23, %24 : vector<8x256xf32>
      %26 = arith.addf %22, %25 : vector<8x256xf32>
      %27 = vector.broadcast %11 : vector<1x256xf32> to vector<8x256xf32>
      %28 = arith.addf %26, %27 : vector<8x256xf32>
      %cst_18 = arith.constant 0.000000e+00 : f32
      %29 = vector.broadcast %cst_18 : f32 to vector<8x256xf32>
      %30 = arith.maximumf %28, %29 : vector<8x256xf32>
      %31 = vector.broadcast %12 : vector<1x256xf32> to vector<8x256xf32>
      %32 = arith.mulf %30, %31 : vector<8x256xf32>
      %cst_19 = arith.constant dense<0.000000e+00> : vector<8xf32>
      %33 = vector.multi_reduction <add>, %32, %cst_19 [1] : vector<8x256xf32> to vector<8xf32>
      %34 = vector.shape_cast %33 : vector<8xf32> to vector<8x1xf32>
      %35 = vector.broadcast %13 : vector<1x1xf32> to vector<8x1xf32>
      %36 = arith.addf %34, %35 : vector<8x1xf32>
      %37 = vector.shape_cast %36 : vector<8x1xf32> to vector<8x1xf32>
      %38 = vector.broadcast %37 : vector<8x1xf32> to vector<8x128xf32>
      %c0_20 = arith.constant 0 : index
      %c0_21 = arith.constant 0 : index
      %39 = vector.load %arg8[%c0_20, %c0_21] : memref<8x128xf32, #tpu.memory_space<vmem>>, vector<8x128xf32>
      tpu.vector_store %arg8[%c0_20, %c0_21], %38 {strides = array<i32>} : memref<8x128xf32, #tpu.memory_space<vmem>>, vector<8x128xf32>,
    } else {
    }
    return
  }
  func.func @transform_0(%arg0: i32, %arg1: i32, %arg2: memref<8xi32, #tpu.memory_space<smem>>) -> (i32, i32, i32) {
    %c8_i32 = arith.constant 8 : i32
    %0 = arith.muli %arg0, %c8_i32 : i32
    %1 = arith.addi %0, %arg1 : i32
    %2 = arith.index_cast %1 : i32 to index
    %3 = memref.load %arg2[%2] : memref<8xi32, #tpu.memory_space<smem>>
    %c0_i32 = arith.constant 0 : i32
    %c0_i32_0 = arith.constant 0 : i32
    %c0_i32_1 = arith.constant 0 : i32
    return %3, %c0_i32, %c0_i32_0 : i32, i32, i32
  }
  func.func @transform_1(%arg0: i32, %arg1: i32, %arg2: memref<8xi32, #tpu.memory_space<smem>>) -> (i32, i32) {
    %c0_i32 = arith.constant 0 : i32
    %c0_i32_0 = arith.constant 0 : i32
    return %arg0, %c0_i32 : i32, i32
  }
  func.func @transform_2(%arg0: i32, %arg1: i32, %arg2: memref<8xi32, #tpu.memory_space<smem>>) -> (i32, i32) {
    %c0_i32 = arith.constant 0 : i32
    %c0_i32_0 = arith.constant 0 : i32
    %c0_i32_1 = arith.constant 0 : i32
    return %c0_i32, %c0_i32_0 : i32, i32
  }
  func.func @transform_3(%arg0: i32, %arg1: i32, %arg2: memref<8xi32, #tpu.memory_space<smem>>) -> (i32, i32) {
    %c0_i32 = arith.constant 0 : i32
    %c0_i32_0 = arith.constant 0 : i32
    %c0_i32_1 = arith.constant 0 : i32
    return %c0_i32, %c0_i32_0 : i32, i32
  }
  func.func @transform_4(%arg0: i32, %arg1: i32, %arg2: memref<8xi32, #tpu.memory_space<smem>>) -> (i32, i32) {
    %c0_i32 = arith.constant 0 : i32
    %c0_i32_0 = arith.constant 0 : i32
    %c0_i32_1 = arith.constant 0 : i32
    return %c0_i32, %c0_i32_0 : i32, i32
  }
  func.func @transform_5(%arg0: i32, %arg1: i32, %arg2: memref<8xi32, #tpu.memory_space<smem>>) -> (i32, i32) {
    %c0_i32 = arith.constant 0 : i32
    %c0_i32_0 = arith.constant 0 : i32
    return %arg0, %c0_i32 : i32, i32
  }
}

</mosaic_0001>

<bundles_post_ra>
// kernel: tpu_custom_call.1
= control target key start
LH: loop header
LB: loop body
LE: loop exit
PB: predicated region body
PF: predicated region fallthrough
CT: control target
= control target key end

     0   :  { %s642_s24 = smov [#allocation4]   ;;  %s770_s0 = inlined_call_operand.vmem [shape: s32[8], index: 0, kind: input, shape index: {}]   ;;  %s771_s1 = inlined_call_operand.vmem [shape: f32[100,1,32], index: 1, kind: input, shape index: {}]   ;;  %s772_s2 = inlined_call_operand.vmem [shape: f32[8,1], index: 2, kind: input, shape index: {}]   ;;  %s773_s3 = inlined_call_operand.vmem [shape: bf16[32,32], index: 3, kind: input, shape index: {}]   ;;  %s774_s4 = inlined_call_operand.vmem [shape: bf16[32,256], index: 4, kind: input, shape index: {}]   ;;  %s775_s5 = inlined_call_operand.vmem [shape: f32[5,256], index: 5, kind: input, shape index: {}]   ;;  %s776_s6 = inlined_call_operand.hbm [shape: f32[8,128], index: 6, kind: output, shape index: {}]  }
   0x1   :  { %s12_s23 = sshll.u32 %s770_s0, 4  ;;  %s13_s23 = int_to_ptr.vmem [resolvable:$true] %s12_s23 }
   0x2   :  { %15 = dma.vmem_to_smem %s13_s23, 16, %s642_s24, [#allocation3] }
   0x3   :  { %624 = dma.done.wait [#allocation3], 16 }
   0x4   :  { %625 = vsyncadd [#allocation3], 4294967280 }
   0x5   :  { %18 = sfence }
   0x6   :  { %19 = vsyncpa [#allocation6], 0  ;;  %s683_s25 = smov 0   ;;  %s685_s26 = smov 0  }
   0x7   :  { %s687_s27 = smov 0  }
   0x8 LB: > { %s489_s0 = sadd.s32 4294967295, %s640_s27   ;;  %s34_s28 = sadd.s32 1, %s636_s26  ;;  %s640_s27 = sphi %s687_s27, %s25_s27   ;;  %s636_s26 = sphi %s685_s26, %s778_s26   ;;  %s632_s25 = sphi %s683_s25, %s777_s25  }
   0x9   : > { %p35_p0 = scmp.ge.s32.totalorder %s34_s28, 8  ;;  %p493_p1 = scmp.ge.s32.totalorder %s640_s27, 1 }
   0xa   : > { %p228_p2 = scmp.lt.s32.totalorder %s640_s27, 9 }
   0xb   : > { %s780_s28 = smov (%p35_p0, %s34_s28), 0 }
   0xc   : > { %p229_p3 = pnand %p493_p1, %p228_p2 }
   0xd   : > { %s258_s29 = sld [smem:[#allocation4 + %s632_s25]] (!%p229_p3)  ;;  %s271_s9 = scalar_lea.vmem (!%p229_p3), [#allocation2], %s632_s25 }
   0xe   : > { %232 = sbr.rel (%p229_p3) target bundleno = 553 (0x229), region = 40  ;;  %p494_p5 = scmp.ne.s32.totalorder (!%p229_p3), %s632_s25, 7 }
  0x13   : > { %p259_p4 = scmp.lt.s32.totalorder %s258_s29, 99  ;;  %vm272_vm0 = vcmask 253952  }
  0x14   : > { %277 = sbr.rel (%p494_p5) target bundleno = 547 (0x223), region = 44 }
  0x15   : > { %s782_s29 = smov (!%p259_p4, %s258_s29), 99 }
  0x16   : > { %s261_s8 = scalar_lea.vmem %s771_s1, %s782_s29 }
  0x17   : > { %v270_v0 = vld [vmem:[%s261_s8] sm:$0x1] }
  0x18   : > { %273 = vst.msk [vmem:[%s271_s9] sm:$0x1] %vm272_vm0, %v270_v0 }
  0x19   : > { %v530_v1 = vld [vmem:[%s773_s3 + $0x8] sm:$0xff]  ;;  %v529_v2 = vld [vmem:[%s773_s3] sm:$0xff]  ;;  %vm305_vm1 = vcmask 261120   ;;  %v517_v5 = vld [vmem:[%s774_s4 + $0x10] sm:$0xf]  ;;  %v643_v18 = vmov 0  }
  0x1a   : > { %315 = vmatpush.bf16.msra.mxu0 %v530_v1  ;;  %v534_v6 = vld [vmem:[%s774_s4 + $0x14] sm:$0xf0]  ;;  %v533_v7 = vld [vmem:[%s774_s4 + $0x14] sm:$0xf]  ;;  %v519_v9 = vld [vmem:[%s774_s4 + $0x18] sm:$0xf0]  ;;  %568 = vset.pattern.permute.xlu0 %v643_v18 }
  0x1b   : > { %v518_v8 = vor.u32 %v534_v6, %v517_v5  ;;  %v522_v10 = vor.u32 %v533_v7, %v519_v9  ;;  %v509_v11 = vld [vmem:[%s774_s4] sm:$0xf]  ;;  %v532_v12 = vld [vmem:[%s774_s4 + $0x4] sm:$0xf0]  ;;  %v531_v13 = vld [vmem:[%s774_s4 + $0x4] sm:$0xf]  ;;  %569 = vset.pattern.permute.xlu1 %v643_v18 }
  0x1c   : > { %v510_v14 = vor.u32 %v532_v12, %v509_v11  ;;  %v511_v15 = vld [vmem:[%s774_s4 + $0x8] sm:$0xf0]  ;;  %v279_v17 = vld [vmem:[%s772_s2] sm:$0xff] }
  0x1d   : > { %369 = vmatpush.bf16.msra.mxu1 %v518_v8  ;;  %382 = vmatpush.bf16.msra.mxu2 %v522_v10  ;;  %v514_v16 = vor.u32 %v531_v13, %v511_v15  ;;  %v280_v19 = vld [vmem:[%s775_s5] ss:$0 sm:$0xff]  ;;  %v495_v25 = vld [vmem:[%s775_s5 + $0x1] ss:$8 sm:$0x3] }
  0x1e   : > { %316 = vmatpush.bf16.msra.mxu0 %v529_v2  ;;  %330 = vperm.xlu0 %568, %v279_v17   ;;  %v334_v26 = vperm.slane %v495_v25, 0  ;;  %v496_v29 = vld [vmem:[%s775_s5 + $0x2] ss:$8 sm:$0x3]  ;;  %v335_v30 = vperm.slane %v495_v25, 1 }
  0x1f   : > { %v278_v3 = vld [vmem:[#allocation2] sm:$0xff]  ;;  %v390_v33 = vperm.slane %v496_v29, 0  ;;  %v391_v36 = vperm.slane %v496_v29, 1 }
  0x20   : > { %v288_v4 = vpack.c.bf16 %v278_v3, %v278_v3  ;;  %v497_v38 = vld [vmem:[%s775_s5 + $0x3] ss:$8 sm:$0x3]  ;;  %v287_v50 = vld [vmem:[%s775_s5 + $0x4] ss:$0 sm:$0xff] }
  0x21   : > { %370 = vmatpush.bf16.msra.mxu1 %v510_v14  ;;  %383 = vmatpush.bf16.msra.mxu2 %v514_v16  ;;  %v399_v43 = vperm.slane %v497_v38, 0  ;;  %v400_v44 = vperm.slane %v497_v38, 1 }
  0x22   : > { %506 = vmatmul.msk.bf16.vlgmr.msra.gmra.mxu0 %vm305_vm1, %v288_v4 }
  0x90   : > { %v331_v27 = vpop.permute.xlu0 %330 }
  0x91   : > { %v338_v28 = vmul.f32 %v334_v26, %v331_v27  ;;  %v339_v34 = vmul.f32 %v335_v30, %v331_v27 }
  0x9f   : > { %v318_v20 = vpop.f32.mrf.mxu0 }
  0xa0   : > { %v319_v21 = vadd.f32 %v318_v20, %v280_v19 }
  0xa2   : > { %570 = vtanh.f32 %v319_v21 }
  0xa7   : > { %v320_v22 = vpop.f32.mrf.mxu0 }
  0xa8   : > { %v571_v23 = vpop.eup %570 }
  0xa9   : > { %v323_v24 = vpack.c.bf16 %v571_v23, %v571_v23 }
  0xab   : > { %523 = vmatmul.msk.bf16.vlgmr.msra.gmra.mxu1 %vm305_vm1, %v323_v24  ;;  %524 = vmatmul.msk.bf16.vlgmr.msra.gmra.mxu2 %vm305_vm1, %v323_v24 }
 0x128   : > { %v372_v31 = vpop.f32.mrf.mxu1 }
 0x129   : > { %v373_v32 = vadd.f32 %v372_v31, %v338_v28 }
 0x12b   : > { %v394_v35 = vadd.f32 %v390_v33, %v373_v32 }
 0x12d   : > { %v396_v41 = vmax.f32 %v394_v35, 0.0 }
 0x12e   : > { %v385_v37 = vpop.f32.mrf.mxu2 }
 0x12f   : > { %v386_v39 = vadd.f32 %v385_v37, %v339_v34  ;;  %v403_v46 = vmul.f32 %v399_v43, %v396_v41 }
 0x130   : > { %v374_v40 = vpop.f32.mrf.mxu1 }
 0x131   : > { %v395_v42 = vadd.f32 %v391_v36, %v386_v39 }
 0x133   : > { %v397_v45 = vmax.f32 %v395_v42, 0.0 }
 0x135   : > { %v404_v47 = vmul.f32 %v400_v44, %v397_v45 }
 0x136   : > { %v387_v48 = vpop.f32.mrf.mxu2 }
 0x137   : > { %v405_v49 = vadd.f32 %v404_v47, %v403_v46 }
 0x139   : > { %406 = vadd.xlane.f32.xlu0 %v405_v49 }
 0x1ac   : > { %v407_v51 = vpop.xlane.xlu0 %406 }
 0x1ad   : > { %v408_v52 = vadd.f32 %v407_v51, %v287_v50 }
 0x1af   : > { %411 = vperm.xlu1 %569, %v408_v52  }
 0x221   : > { %v412_v53 = vpop.permute.xlu1 %411 }
 0x222   : > { %414 = vst [vmem:[#allocation5] sm:$0xff] %v412_v53 }
 0x223 PF: > { %p539_p6 = scmp.eq.s32.totalorder %s489_s0, 7  ;;  %s425_s23 = sshll.u32 %s776_s6, 4  ;;  %s426_s23 = int_to_ptr.hbm [resolvable:$true] %s425_s23 }
 0x224   : > { %s644_s24 = smov [#allocation5]  }
 0x225   : > { %s423_s25 = sshll.u32 %s644_s24, 4  ;;  %s424_s25 = int_to_ptr.vmem [resolvable:$true] %s423_s25 }
 0x226   : > { %536 = dma.vmem_to_hbm [thread:$0]  (%p539_p6), %s424_s25, 128, %s426_s23, [#allocation6]  }
 0x227   : > { %627 = dma.done.wait (%p539_p6), [#allocation6], 128  }
 0x228   : > { %629 = vsyncadd (%p539_p6), [#allocation6], 4294967168 }
 0x229 PF: > { %s25_s27 = sadd.s32 1, %s640_s27   ;;  %s777_s25 = smov %s636_s26 }
 0x22a   : > { %p22_p7 = scmp.ge.s32.totalorder %s25_s27, 10   ;;  %s778_s26 = smov %s780_s28 }
 0x22c   :  { %24 = sbr.rel (!%p22_p7) target bundleno = 8 (0x8), region = 79 }
 0x231   :  { %439 = vsyncpa [#allocation6], 1 }
 0x232   :  { %441 = vsyncpa [#allocation6 + $0x1], 1 }

</bundles_post_ra>
